<compile_context>
chip_gen: v5e
topology: v5e:2x2
jax: 0.10.0
libtpu: 0.0.40
codegen_flags: <defaults>
</compile_context>

<pallas_src>
import jax
import jax.numpy as jnp
from jax.experimental import pallas as pl
from jax.experimental.pallas import tpu as pltpu

_LANES = 128


def _round_up(a, m):
    return -(-a // m) * m


def _default_tile_rows():
    """4096 on v6e/v7x (more HBM BW, 32 MiB scoped VMEM), 2048 otherwise."""
    try:
        kind = jax.devices()[0].device_kind.lower()
    except Exception:
        return 2048
    if ("v6" in kind) or ("v7" in kind) or ("tpu7" in kind):
        return 4096
    return 2048


def _poly_kernel(x_ref, wb_ref, o_ref):
    # x_ref : (3, TR, 128) f32/bf16 VMEM block (feature-major, batch on lanes)
    # wb_ref: (4,) f32 in SMEM = [w0, w1, w2, b]
    # o_ref : (TR, 128) f32 lane-dense output block
    w0 = wb_ref[0]
    w1 = wb_ref[1]
    w2 = wb_ref[2]
    b = wb_ref[3]
    x0 = x_ref[0].astype(jnp.float32)
    x1 = x_ref[1].astype(jnp.float32)
    x2 = x_ref[2].astype(jnp.float32)
    o_ref[...] = x0 * w0 + x1 * w1 + x2 * w2 + b


def poly_regression(x, weight, bias, *, tile_rows=None, feature_major=False,
                    return_padded=False):
    """Forward of nn.Linear(3, 1).

    x       : (N, 3)  — or (3, N) if feature_major=True (skips the wrapper
              transpose, the single biggest extra HBM pass).
    weight  : (1, 3)  (PyTorch layout)
    bias    : (1,)
    Returns (N, 1) f32 (or the padded lane-dense (rows, 128) slab if
    return_padded=True).
    """
    if feature_major:
        in_f, n = x.shape
        xt = x                              # already (3, N)
    else:
        n, in_f = x.shape
        xt = jnp.transpose(x)               # (3, N) — one extra XLA pass
    assert in_f == 3, "PolyRegression expects 3 input features"

    # bf16 inputs are streamed as bf16 (half the HBM read); everything else is
    # cast to f32 (nn.Linear f32 semantics).
    if xt.dtype == jnp.bfloat16:
        slab_dtype = jnp.bfloat16
        sub = 16                            # sublane multiple for 2-byte dtypes
    else:
        xt = xt.astype(jnp.float32)
        slab_dtype = jnp.float32
        sub = 8

    if tile_rows is None:
        tile_rows = _default_tile_rows()

    # Rows of 128 lanes needed for N batch elements.
    rows = max(1, -(-n // _LANES))          # ceil(N / 128)
    # Number of grid steps: just enough tiles of <= tile_rows, but at least 2
    # when there is enough work so v7x can use both TensorCores.
    num_tiles = max(1, -(-rows // tile_rows))
    if rows >= 2 * sub:
        num_tiles = max(num_tiles, 2)
    # Tile rows: ceil(rows / num_tiles) rounded to the sublane multiple, so
    # total padding is at most ~(sub-1) rows per tile (not tile_rows-1).
    tr = max(sub, _round_up(-(-rows // num_tiles), sub))
    rows_padded = num_tiles * tr
    n_pad = rows_padded * _LANES

    # (3, N) -> (3, N_pad) -> (3, rows, 128); batch index n maps to
    # (row = n // 128, lane = n % 128), so row-major order is preserved.
    xt = jnp.pad(xt, ((0, 0), (0, n_pad - n)))
    x3 = xt.reshape(in_f, rows_padded, _LANES)

    # Weights + bias as 4 f32 scalars in SMEM.
    wb = jnp.concatenate(
        [weight.reshape(-1), bias.reshape(-1)]).astype(jnp.float32)  # (4,)

    in_bytes = in_f * n_pad * jnp.dtype(slab_dtype).itemsize
    out_bytes = 4 * n_pad

    out2d = pl.pallas_call(
        _poly_kernel,
        out_shape=jax.ShapeDtypeStruct((rows_padded, _LANES), jnp.float32),
        grid=(num_tiles,),
        in_specs=[
            pl.BlockSpec((in_f, tr, _LANES), lambda i: (0, i, 0)),
            pl.BlockSpec(memory_space=pltpu.MemorySpace.SMEM),
        ],
        out_specs=pl.BlockSpec((tr, _LANES), lambda i: (i, 0)),
        compiler_params=pltpu.CompilerParams(
            dimension_semantics=("parallel",),
        ),
        cost_estimate=pl.CostEstimate(
            flops=6 * n_pad, transcendentals=0,
            bytes_accessed=in_bytes + out_bytes + 16),
    )(x3, wb)

    if return_padded:
        return out2d                        # (rows_padded, 128) lane-dense slab
    # Lane-dense slab back to (N, 1), dropping padded lanes.
    return out2d.reshape(n_pad)[:n].reshape(n, 1)


if __name__ == "__main__":
    key = jax.random.PRNGKey(0)
    kx, kw, kb, kx2, kx3 = jax.random.split(key, 5)

    # nn.Linear(3, 1) init convention: uniform(-1/sqrt(3), 1/sqrt(3))
    bound = 1.0 / (3.0 ** 0.5)
    weight = jax.random.uniform(kw, (1, 3), jnp.float32, -bound, bound)
    bias = jax.random.uniform(kb, (1,), jnp.float32, -bound, bound)

    def ref_fn(xf32):
        # Exact f32 elementwise reference (matches kernel math).
        return (xf32 * weight.reshape(1, 3)).sum(axis=1, keepdims=True) + bias

    # Small batch consistent with the module's forward: (N, 3) -> (N, 1).
    x = jax.random.normal(kx, (8, 3), jnp.float32)
    out = jax.block_until_ready(poly_regression(x, weight, bias))
    assert out.shape == (8, 1)
    assert jnp.allclose(out, ref_fn(x), atol=1e-5), "mismatch (N=8)"

    # Non-multiple-of-128 batch exercises the padding path.
    x2 = jax.random.normal(kx2, (517, 3), jnp.float32)
    out2 = jax.block_until_ready(poly_regression(x2, weight, bias))
    assert out2.shape == (517, 1)
    assert jnp.allclose(out2, ref_fn(x2), atol=1e-5), "mismatch (N=517)"

    # Feature-major (3, N) input path: skips the wrapper transpose entirely.
    out2_fm = jax.block_until_ready(
        poly_regression(x2.T, weight, bias, feature_major=True))
    assert out2_fm.shape == (517, 1)
    assert jnp.allclose(out2_fm, ref_fn(x2), atol=1e-5), "mismatch (feature-major)"

    # bf16 input path: halves the dominant HBM read; upcast happens in-kernel.
    xb = jax.random.normal(kx3, (300, 3), jnp.float32).astype(jnp.bfloat16)
    out3 = jax.block_until_ready(poly_regression(xb, weight, bias))
    assert out3.shape == (300, 1)
    assert jnp.allclose(out3, ref_fn(xb.astype(jnp.float32)), atol=1e-4), \
        "mismatch (bf16)"

    print("KERNEL_OK")
</pallas_src>

<mosaic_0001>
module attributes {stable_mosaic.version = 11 : i64} {
  func.func @_poly_kernel(%arg0: i32, %arg1: memref<3x8x128xf32, #tpu.memory_space<vmem>>, %arg2: memref<4xf32, #tpu.memory_space<smem>>, %arg3: memref<8x128xf32, #tpu.memory_space<vmem>>) attributes {dimension_semantics = [#tpu.dimension_semantics<parallel>], iteration_bounds = array<i64: 1>, scalar_prefetch = 0 : i64, scratch_operands = 0 : i64, tpu.core_type = #tpu.core_type<tc>, window_params = [{transform_indices = @transform_0, window_bounds = array<i64: 3, 8, 128>}, {transform_indices = @transform_1, window_bounds = array<i64: 4>}, {transform_indices = @transform_2, window_bounds = array<i64: 8, 128>}]} {
    %c0 = arith.constant 0 : index
    %0 = memref.load %arg2[%c0] : memref<4xf32, #tpu.memory_space<smem>>
    %c1 = arith.constant 1 : index
    %1 = memref.load %arg2[%c1] : memref<4xf32, #tpu.memory_space<smem>>
    %c2 = arith.constant 2 : index
    %2 = memref.load %arg2[%c2] : memref<4xf32, #tpu.memory_space<smem>>
    %c3 = arith.constant 3 : index
    %3 = memref.load %arg2[%c3] : memref<4xf32, #tpu.memory_space<smem>>
    %c0_0 = arith.constant 0 : index
    %c0_1 = arith.constant 0 : index
    %c0_2 = arith.constant 0 : index
    %4 = vector.load %arg1[%c0_0, %c0_1, %c0_2] : memref<3x8x128xf32, #tpu.memory_space<vmem>>, vector<1x8x128xf32>
    %5 = vector.shape_cast %4 : vector<1x8x128xf32> to vector<8x128xf32>
    %c1_3 = arith.constant 1 : index
    %c0_4 = arith.constant 0 : index
    %c0_5 = arith.constant 0 : index
    %6 = vector.load %arg1[%c1_3, %c0_4, %c0_5] : memref<3x8x128xf32, #tpu.memory_space<vmem>>, vector<1x8x128xf32>
    %7 = vector.shape_cast %6 : vector<1x8x128xf32> to vector<8x128xf32>
    %c2_6 = arith.constant 2 : index
    %c0_7 = arith.constant 0 : index
    %c0_8 = arith.constant 0 : index
    %8 = vector.load %arg1[%c2_6, %c0_7, %c0_8] : memref<3x8x128xf32, #tpu.memory_space<vmem>>, vector<1x8x128xf32>
    %9 = vector.shape_cast %8 : vector<1x8x128xf32> to vector<8x128xf32>
    %10 = vector.broadcast %0 : f32 to vector<8x128xf32>
    %11 = arith.mulf %5, %10 : vector<8x128xf32>
    %12 = vector.broadcast %1 : f32 to vector<8x128xf32>
    %13 = arith.mulf %7, %12 : vector<8x128xf32>
    %14 = arith.addf %11, %13 : vector<8x128xf32>
    %15 = vector.broadcast %2 : f32 to vector<8x128xf32>
    %16 = arith.mulf %9, %15 : vector<8x128xf32>
    %17 = arith.addf %14, %16 : vector<8x128xf32>
    %18 = vector.broadcast %3 : f32 to vector<8x128xf32>
    %19 = arith.addf %17, %18 : vector<8x128xf32>
    %c0_9 = arith.constant 0 : index
    %c0_10 = arith.constant 0 : index
    %20 = vector.load %arg3[%c0_9, %c0_10] : memref<8x128xf32, #tpu.memory_space<vmem>>, vector<8x128xf32>
    tpu.vector_store %arg3[%c0_9, %c0_10], %19 {strides = array<i32>} : memref<8x128xf32, #tpu.memory_space<vmem>>, vector<8x128xf32>,
    return
  }
  func.func @transform_0(%arg0: i32) -> (i32, i32, i32) {
    %c0_i32 = arith.constant 0 : i32
    %c0_i32_0 = arith.constant 0 : i32
    %c0_i32_1 = arith.constant 0 : i32
    return %c0_i32, %arg0, %c0_i32_0 : i32, i32, i32
  }
  func.func @transform_1(%arg0: i32) -> i32 {
    %c0_i32 = arith.constant 0 : i32
    %c0_i32_0 = arith.constant 0 : i32
    return %c0_i32 : i32
  }
  func.func @transform_2(%arg0: i32) -> (i32, i32) {
    %c0_i32 = arith.constant 0 : i32
    %c0_i32_0 = arith.constant 0 : i32
    return %arg0, %c0_i32 : i32, i32
  }
}

</mosaic_0001>

<bundles_post_ra>
// kernel: tpu_custom_call.1
= control target key start
LH: loop header
LB: loop body
LE: loop exit
PB: predicated region body
PF: predicated region fallthrough
CT: control target
= control target key end

     0   :  { %7 = vsyncpa [#allocation3], 0  ;;  %s182_s0 = inlined_call_operand.hbm [shape: f32[3,8,128], index: 0, kind: input, shape index: {}]   ;;  %s183_s1 = inlined_call_operand.hbm [shape: f32[4], index: 1, kind: input, shape index: {}]   ;;  %s184_s2 = inlined_call_operand.hbm [shape: f32[8,128], index: 2, kind: output, shape index: {}]  }
   0x1   :  { %8 = vsyncpa [#allocation5], 0 }
   0x2   :  { %9 = vsyncpa [#allocation4], 0  ;;  %s14_s11 = sshll.u32 %s182_s0, 4  ;;  %s153_s12 = smov [#allocation2]   ;;  %s15_s11 = int_to_ptr.hbm [resolvable:$true] %s14_s11 }
   0x3   :  { %s16_s13 = sshll.u32 %s153_s12, 4  ;;  %s28_s16 = sshll.u32 %s183_s1, 4  ;;  %s17_s13 = int_to_ptr.vmem [resolvable:$true] %s16_s13  ;;  %s29_s16 = int_to_ptr.hbm [resolvable:$true] %s28_s16 }
   0x4   :  { %s154_s17 = smov 128   ;;  %s155_s18 = smov 8  }
   0x5   :  { %22 = dma.hbm_to_vmem [thread:$0]  %s15_s11, 384, %s17_s13, [#allocation3], %s154_s17, %s154_s17, %s155_s18  }
   0x6   :  { %s156_s19 = smov [#allocation6]  }
   0x7   :  { %31 = dma.hbm_to_smem %s29_s16, 16, %s156_s19, [#allocation5]  }
   0x8   :  { %147 = dma.done.wait [#allocation3], 384  }
   0x9   :  { %148 = vsyncadd [#allocation3], 4294966912 }
   0xa   :  { %149 = dma.done.wait [#allocation5], 16  }
   0xb   :  { %150 = vsyncadd [#allocation5], 4294967280 }
   0xc   :  { %40 = sfence }
   0xd   :  { %s41_s0 = sld [smem:[#allocation6]]  ;;  %v45_v0 = vld [vmem:[#allocation2] sm:$0xff]  ;;  %v47_v1 = vld [vmem:[#allocation2 + $0x8] sm:$0xff]  ;;  %v49_v2 = vld [vmem:[#allocation2 + $0x10] sm:$0xff]  ;;  %s157_s1 = smov [#allocation7]  }
   0xe   :  { %s79_s20 = sld [smem:[#allocation6 + $0x1]]  ;;  %s66_s23 = sshll.u32 %s157_s1, 4  ;;  %s67_s23 = int_to_ptr.vmem [resolvable:$true] %s66_s23 }
   0xf   :  { %s80_s21 = sld [smem:[#allocation6 + $0x2]]  ;;  %s68_s26 = sshll.u32 %s184_s2, 4  ;;  %s69_s26 = int_to_ptr.hbm [resolvable:$true] %s68_s26 }
  0x10   :  { %s81_s22 = sld [smem:[#allocation6 + $0x3]] }
  0x13   :  { %v50_v3 = vstv %s41_s0 }
  0x14   :  { %v51_v4 = vmul.f32 %v50_v3, %v45_v0  ;;  %v52_v5 = vstv %s79_s20 }
  0x15   :  { %v53_v6 = vmul.f32 %v52_v5, %v47_v1  ;;  %v55_v7 = vstv %s80_s21 }
  0x16   :  { %v56_v8 = vmul.f32 %v55_v7, %v49_v2  ;;  %v58_v10 = vstv %s81_s22 }
  0x17   :  { %v54_v9 = vadd.f32 %v53_v6, %v51_v4 }
  0x19   :  { %v57_v11 = vadd.f32 %v56_v8, %v54_v9 }
  0x1b   :  { %v59_v12 = vadd.f32 %v58_v10, %v57_v11 }
  0x1d   :  { %60 = vst [vmem:[#allocation7] sm:$0xff] %v59_v12 }
  0x1e   :  { %71 = dma.vmem_to_hbm [thread:$0]  %s67_s23, 128, %s69_s26, [#allocation4]  }
  0x1f   :  { %151 = dma.done.wait [#allocation4], 128  }
  0x20   :  { %152 = vsyncadd [#allocation4], 4294967168 }
  0x21   :  { %76 = vsyncpa [#allocation3], 1 }
  0x22   :  { %77 = vsyncpa [#allocation4], 1 }
  0x23   :  { %78 = vsyncpa [#allocation5], 1 }

</bundles_post_ra>
